<compile_context>
chip_gen: v6e
topology: v6e:2x2x1
jax: 0.10.0
libtpu: 0.0.40
codegen_flags: <defaults>
</compile_context>

<pallas_src>
import math

import jax
import jax.numpy as jnp
from jax.experimental import pallas as pl
from jax.experimental.pallas import tpu as pltpu


# ---------------------------------------------------------------------------
# Kernel: single-invocation, chunked HBM->HBM DMA copy (no grid, no VMEM).
# ---------------------------------------------------------------------------
def _make_dma_copy_kernel(chunk_bounds):
    """Kernel factory. `chunk_bounds` is a static tuple of (start, size)
    pairs along axis 0 of the (HBM-resident) input/output refs."""

    def kernel(x_ref, o_ref, sem):
        copies = []
        for i, (start, size) in enumerate(chunk_bounds):
            cp = pltpu.make_async_copy(
                x_ref.at[pl.ds(start, size)],
                o_ref.at[pl.ds(start, size)],
                sem.at[i],
            )
            cp.start()
            copies.append(cp)
        for cp in copies:
            cp.wait()

    return kernel


_LANE_CANDIDATES = (2048, 1024, 512, 256, 128)


def _num_chunks(total_bytes: int) -> int:
    # Engage multiple DMA queues only when there is enough data to split.
    if total_bytes >= (8 << 20):
        return 4
    if total_bytes >= (2 << 20):
        return 2
    return 1


def _chunk_bounds(extent: int, n_chunks: int, align: int):
    """Static (start, size) pairs covering [0, extent) along axis 0."""
    if n_chunks <= 1 or extent < n_chunks * align:
        return ((0, extent),)
    bounds = []
    start = 0
    for i in range(n_chunks):
        if i == n_chunks - 1:
            end = extent
        else:
            end = (extent * (i + 1) // n_chunks) // align * align
        if end > start:
            bounds.append((start, end - start))
            start = end
    return tuple(bounds)


def reshape_forward(x, reshape, *, force_pallas: bool = True):
    """Equivalent of Reshape(reshape)(x) == x.view((batch, *reshape))."""
    batch = x.shape[0]
    n_in = math.prod(x.shape[1:])
    n_out = math.prod(reshape)
    assert n_in == n_out, (
        f"cannot view {x.shape} as {(batch, *reshape)}: {n_in} != {n_out}"
    )
    out_shape = (batch, *reshape)
    total = batch * n_in

    if not force_pallas or total == 0:
        # A row-major reshape is pure metadata in XLA: zero HBM traffic.
        return x.reshape(out_shape)

    dtype = x.dtype
    itemsize = jnp.dtype(dtype).itemsize
    total_bytes = total * itemsize
    cost = pl.CostEstimate(
        flops=0, transcendentals=0, bytes_accessed=2 * total_bytes
    )

    # Present the data as a lane-multiple 2-D slab when possible (free
    # metadata reshape); otherwise a flat 1-D buffer.  The DMA engine only
    # sees a contiguous HBM region either way — no (8,128) constraints apply
    # because nothing is staged through VMEM.
    lanes = next((l for l in _LANE_CANDIDATES if total % l == 0), None)
    if lanes is not None:
        slab_shape = (total // lanes, lanes)
        align = 8          # chunk on row boundaries
    else:
        slab_shape = (total,)
        align = 512        # chunk on element boundaries

    x_slab = x.reshape(slab_shape)  # row-major metadata reshape, no copy

    bounds = _chunk_bounds(slab_shape[0], _num_chunks(total_bytes), align)

    out_slab = pl.pallas_call(
        _make_dma_copy_kernel(bounds),
        out_shape=jax.ShapeDtypeStruct(slab_shape, dtype),
        in_specs=[pl.BlockSpec(memory_space=pl.ANY)],
        out_specs=pl.BlockSpec(memory_space=pl.ANY),
        scratch_shapes=[pltpu.SemaphoreType.DMA((len(bounds),))],
        cost_estimate=cost,
    )(x_slab)

    return out_slab.reshape(out_shape)


if __name__ == "__main__":
    key = jax.random.PRNGKey(0)

    # ViT-style example: NCHW input (2, 4, 16, 16) viewed as (2, 4, 256).
    x = jax.random.normal(key, (2, 4, 16, 16), dtype=jnp.float32)
    y = jax.block_until_ready(reshape_forward(x, (4, 256)))
    ref = x.reshape((2, 4, 256))
    assert y.shape == (2, 4, 256), y.shape
    assert y.dtype == x.dtype
    assert bool(jnp.array_equal(y, ref))

    # 2 MiB input: exercises the multi-chunk (multi-DMA-queue) path.
    x2 = jax.random.normal(jax.random.PRNGKey(1), (16, 8, 64, 64),
                           dtype=jnp.float32)
    y2 = jax.block_until_ready(reshape_forward(x2, (8, 64 * 64)))
    assert y2.shape == (16, 8, 4096), y2.shape
    assert bool(jnp.array_equal(y2, x2.reshape((16, 8, 4096))))

    # Non-multiple-of-128 element count: flat 1-D HBM->HBM DMA path
    # (no whole-array VMEM block, so no VMEM-OOM risk).
    x3 = jax.random.normal(jax.random.PRNGKey(2), (2, 3, 5, 7),
                           dtype=jnp.float32)
    y3 = jax.block_until_ready(reshape_forward(x3, (3, 35)))
    assert y3.shape == (2, 3, 35), y3.shape
    assert bool(jnp.array_equal(y3, x3.reshape((2, 3, 35))))

    print("KERNEL_OK")
</pallas_src>

<mosaic_0001>
module attributes {stable_mosaic.version = 11 : i64} {
  func.func @kernel(%arg0: memref<1x2048xf32, #tpu.memory_space<any>>, %arg1: memref<1x2048xf32, #tpu.memory_space<any>>, %arg2: memref<1x!tpu.dma_semaphore, #tpu.memory_space<semaphore_mem>>) attributes {dimension_semantics = [], scalar_prefetch = 0 : i64, scratch_operands = 1 : i64, tpu.core_type = #tpu.core_type<tc>} {
    %c0_i32 = arith.constant 0 : i32
    %c0_i32_0 = arith.constant 0 : i32
    %c0_i32_1 = arith.constant 0 : i32
    %0 = tpu.memref_slice %arg0[%c0_i32_0, %c0_i32_1] : memref<1x2048xf32, #tpu.memory_space<any>> -> memref<1x2048xf32, #tpu.memory_space<any>>
    %c0_i32_2 = arith.constant 0 : i32
    %c0_i32_3 = arith.constant 0 : i32
    %1 = tpu.memref_slice %arg1[%c0_i32_2, %c0_i32_3] : memref<1x2048xf32, #tpu.memory_space<any>> -> memref<1x2048xf32, #tpu.memory_space<any>>
    %2 = tpu.memref_slice %arg2[%c0_i32] : memref<1x!tpu.dma_semaphore, #tpu.memory_space<semaphore_mem>> -> memref<1x!tpu.dma_semaphore, #tpu.memory_space<semaphore_mem>>
    %3 = tpu.memref_squeeze %2 : memref<1x!tpu.dma_semaphore, #tpu.memory_space<semaphore_mem>> -> memref<!tpu.dma_semaphore, #tpu.memory_space<semaphore_mem>>
    tpu.enqueue_dma source(%0 : memref<1x2048xf32, #tpu.memory_space<any>>) target(%1 : memref<1x2048xf32, #tpu.memory_space<any>>) target_semaphore(%3 : memref<!tpu.dma_semaphore, #tpu.memory_space<semaphore_mem>>)
    %c0_i32_4 = arith.constant 0 : i32
    %c0_i32_5 = arith.constant 0 : i32
    %c0_i32_6 = arith.constant 0 : i32
    %4 = tpu.memref_slice %arg0[%c0_i32_5, %c0_i32_6] : memref<1x2048xf32, #tpu.memory_space<any>> -> memref<1x2048xf32, #tpu.memory_space<any>>
    %c0_i32_7 = arith.constant 0 : i32
    %c0_i32_8 = arith.constant 0 : i32
    %5 = tpu.memref_slice %arg1[%c0_i32_7, %c0_i32_8] : memref<1x2048xf32, #tpu.memory_space<any>> -> memref<1x2048xf32, #tpu.memory_space<any>>
    %6 = tpu.memref_slice %arg2[%c0_i32_4] : memref<1x!tpu.dma_semaphore, #tpu.memory_space<semaphore_mem>> -> memref<1x!tpu.dma_semaphore, #tpu.memory_space<semaphore_mem>>
    %7 = tpu.memref_squeeze %6 : memref<1x!tpu.dma_semaphore, #tpu.memory_space<semaphore_mem>> -> memref<!tpu.dma_semaphore, #tpu.memory_space<semaphore_mem>>
    tpu.wait_dma2 semaphore(%7 : memref<!tpu.dma_semaphore, #tpu.memory_space<semaphore_mem>>) src(%4 : memref<1x2048xf32, #tpu.memory_space<any>>) dst(%5 : memref<1x2048xf32, #tpu.memory_space<any>>)
    return
  }
}

</mosaic_0001>

<bundles_post_ra>
// kernel: tpu_custom_call.1
= control target key start
LH: loop header
LB: loop body
LE: loop exit
PB: predicated region body
PF: predicated region fallthrough
CT: control target
= control target key end

     0   :  { %s28_s6 = smov [#allocation2]   ;;  %s29_s7 = smov 131072   ;;  %s47_s0 = inlined_call_operand.hbm [shape: f32[1,2048], index: 0, kind: input, shape index: {}]   ;;  %s48_s1 = inlined_call_operand.hbm [shape: f32[1,2048], index: 1, kind: output, shape index: {}]  }
   0x1   :  { %s30_s8 = smov 0  }
   0x2   :  { %12 = dma.general %s47_s0, 256, %s48_s1, %s28_s6, %s29_s7, [#allocation4], %s30_s8, 0  }
   0x3   :  { %26 = dma.done.wait [#allocation2], 256 }
   0x4   :  { %27 = vsyncadd [#allocation2], 4294967040 }
   0x5   :  { %16 = vsyncmov [#allocation2] }
   0x8   :  { %s17_s13 = vpop.sfrf %16 }
   0x9   :  { %p22_p0 = scmp.ne.s32.totalorder %s17_s13, 0 }
   0xb   :  { %21 = shalt.err (%p22_p0)  }

</bundles_post_ra>
